<compile_context>
chip_gen: v7x
topology: tpu7x:2x2x1
jax: 0.10.0
libtpu: 0.0.40
codegen_flags: <defaults>
</compile_context>

<pallas_src>
import math

import jax
import jax.numpy as jnp
from jax import lax
from jax.experimental import pallas as pl
from jax.experimental.pallas import tpu as pltpu

_LANE = 128          # lane slab reserved per projection (Q / K / V / out)
_NEG = -1e30         # finite "masked" fill (fully-masked rows stay finite)


def _attn_kernel(x_ref, bias_ref, wqkv_ref, bqkv_ref, wo_ref, bo_ref, o_ref):
    """Whole forward pass in one invocation, everything vreg/VMEM resident.

    x_ref    : (R, D)      f32   row-padded flattened activations (R = 16)
    bias_ref : (R, R)      f32   block-diagonal additive mask bias
    wqkv_ref : (D, 3*128)  bf16  [Wq*scale | Wk | Wv], one 128-lane slab each
    bqkv_ref : (1, 3*128)  f32
    wo_ref   : (128, 128)  bf16  zero-padded output projection (pre-transposed)
    bo_ref   : (1, 128)    f32
    o_ref    : (R, 128)    f32   only [:, :D] is meaningful
    """
    P = _LANE

    # Fused QKV projection: one bf16 MXU push, f32 accumulation.
    qkv = jnp.dot(x_ref[...].astype(jnp.bfloat16), wqkv_ref[...],
                  preferred_element_type=jnp.float32) + bqkv_ref[...]
    q = qkv[:, :P]            # lane-slab-aligned slices: no relayout
    k = qkv[:, P:2 * P]
    v = qkv[:, 2 * P:]

    # Block-diagonal scores over all rows at once; contract dim 1 of both
    # operands so k is never transposed.  Zero-padded lanes contribute 0.
    scores = lax.dot_general(q.astype(jnp.bfloat16), k.astype(jnp.bfloat16),
                             (((1,), (1,)), ((), ())),
                             preferred_element_type=jnp.float32)
    scores = scores + bias_ref[...]

    # Single softmax over the whole (R, R) block.
    s_max = jnp.max(scores, axis=-1, keepdims=True)
    e = jnp.exp(scores - s_max)
    denom = jnp.sum(e, axis=-1, keepdims=True)
    attn = e * pl.reciprocal(denom, approx=True)       # EUP vrcp (free slot)

    # TODO(synk): nn.Dropout on attn is identity in eval mode; training-mode
    #             stochastic dropout is not implemented here.

    # attn @ V and the output projection stay in vregs (no VMEM round trip).
    ctx = jnp.dot(attn.astype(jnp.bfloat16), v.astype(jnp.bfloat16),
                  preferred_element_type=jnp.float32)
    out = jnp.dot(ctx.astype(jnp.bfloat16), wo_ref[...],
                  preferred_element_type=jnp.float32) + bo_ref[...]
    o_ref[...] = out.astype(o_ref.dtype)


def prepare_params(params, dim):
    """One-time weight fusion / layout prep (hoisted out of the hot path)."""
    P = _LANE
    scale = 1.0 / math.sqrt(dim)

    def pad_cols(w):                      # (D, D) -> (D, P)
        return jnp.pad(w, ((0, 0), (0, P - dim)))

    wqkv = jnp.concatenate(
        [pad_cols(params["wq"].T * scale),          # fold 1/sqrt(D) into Q
         pad_cols(params["wk"].T),
         pad_cols(params["wv"].T)], axis=1).astype(jnp.bfloat16)     # (D, 3P)
    bqkv = jnp.concatenate(
        [jnp.pad(params["bq"] * scale, (0, P - dim)),
         jnp.pad(params["bk"], (0, P - dim)),
         jnp.pad(params["bv"], (0, P - dim))]).reshape(1, 3 * P)
    wo = jnp.pad(params["wo"].T,
                 ((0, P - dim), (0, P - dim))).astype(jnp.bfloat16)  # (P, P)
    bo = jnp.pad(params["bo"], (0, P - dim)).reshape(1, P)
    return {"wqkv": wqkv, "bqkv": bqkv.astype(jnp.float32),
            "wo": wo, "bo": bo.astype(jnp.float32)}


def prepare_bias(mask, rows_padded):
    """(B, S, S) keep/drop mask -> (R, R) f32 block-diagonal additive bias.

    0 where attention is allowed; -1e30 where masked, across batches, and for
    padded key columns (so padding and other batches never leak in).
    """
    B, S, _ = mask.shape
    bias = jnp.full((rows_padded, rows_padded), _NEG, jnp.float32)
    for b in range(B):
        blk = jnp.where(mask[b] == 0, jnp.float32(_NEG), jnp.float32(0.0))
        bias = bias.at[b * S:(b + 1) * S, b * S:(b + 1) * S].set(blk)
    return bias


@jax.jit
def self_attention_v4(x, bias, fused):
    """x: (B, S, D) f32; bias: (R, R) f32 from prepare_bias; fused: prepare_params."""
    B, S, D = x.shape
    R = bias.shape[0]
    P = _LANE
    x_pad = jnp.pad(x.reshape(B * S, D), ((0, R - B * S), (0, 0)))

    vmem = pl.BlockSpec(memory_space=pltpu.MemorySpace.VMEM)
    out = pl.pallas_call(
        _attn_kernel,
        out_shape=jax.ShapeDtypeStruct((R, P), jnp.float32),
        in_specs=[vmem] * 6,
        out_specs=vmem,
    )(x_pad, bias, fused["wqkv"], fused["bqkv"], fused["wo"], fused["bo"])

    return out[:B * S, :D].reshape(B, S, D).astype(x.dtype)


def _reference(x, mask, params):
    """Pure-JAX reference of the PyTorch forward (dropout in eval mode)."""
    D = x.shape[-1]
    q = x @ params["wq"].T + params["bq"]
    k = x @ params["wk"].T + params["bk"]
    v = x @ params["wv"].T + params["bv"]
    scores = (q @ jnp.swapaxes(k, -1, -2)) / math.sqrt(D)
    scores = jnp.where(mask == 0, -jnp.inf, scores)
    attn = jax.nn.softmax(scores, axis=-1)
    out = attn @ v
    return out @ params["wo"].T + params["bo"]


if __name__ == "__main__":
    # Shapes implied by the module-level mask: b is (3, 4) -> mask (3, 4, 4),
    # i.e. batch=3, seq=4.  Hidden dim chosen as 32.
    B, S, D = 3, 4, 32

    key = jax.random.PRNGKey(0)
    keys = jax.random.split(key, 9)

    bound = 1.0 / math.sqrt(D)
    params = {
        "wq": jax.random.uniform(keys[0], (D, D), jnp.float32, -bound, bound),
        "bq": jax.random.uniform(keys[1], (D,), jnp.float32, -bound, bound),
        "wk": jax.random.uniform(keys[2], (D, D), jnp.float32, -bound, bound),
        "bk": jax.random.uniform(keys[3], (D,), jnp.float32, -bound, bound),
        "wv": jax.random.uniform(keys[4], (D, D), jnp.float32, -bound, bound),
        "bv": jax.random.uniform(keys[5], (D,), jnp.float32, -bound, bound),
        "wo": jax.random.uniform(keys[6], (D, D), jnp.float32, -bound, bound),
        "bo": jax.random.uniform(keys[7], (D,), jnp.float32, -bound, bound),
    }
    x = jax.random.normal(keys[8], (B, S, D), jnp.float32)

    # The module-level mask from the PyTorch file (masks key positions).
    b = jnp.array([[1, 1, 1, 0], [1, 1, 0, 0], [1, 0, 0, 0]], dtype=jnp.int32)
    mask = jnp.repeat(b[:, None, :], S, axis=1)        # (3, 4, 4)

    # One-time preprocessing (hoisted out of the per-call hot path).
    rows_padded = ((B * S + 7) // 8) * 8               # 12 -> 16
    fused = prepare_params(params, D)
    bias = prepare_bias(mask, rows_padded)

    out = self_attention_v4(x, bias, fused)
    out = jax.block_until_ready(out)

    ref = _reference(x, mask, params)
    assert out.shape == (B, S, D)
    # Tolerance accounts for bf16 MXU inputs and the EUP approximate reciprocal.
    assert jnp.allclose(out, ref, atol=2e-2, rtol=2e-2), "mismatch vs reference"

    print("KERNEL_OK")
</pallas_src>

<mosaic_0001>
module attributes {stable_mosaic.version = 11 : i64} {
  func.func @_attn_kernel(%arg0: memref<16x32xf32, #tpu.memory_space<vmem>>, %arg1: memref<16x16xf32, #tpu.memory_space<vmem>>, %arg2: memref<32x384xbf16, #tpu.memory_space<vmem>>, %arg3: memref<1x384xf32, #tpu.memory_space<vmem>>, %arg4: memref<128x128xbf16, #tpu.memory_space<vmem>>, %arg5: memref<1x128xf32, #tpu.memory_space<vmem>>, %arg6: memref<16x128xf32, #tpu.memory_space<vmem>>) attributes {dimension_semantics = [], scalar_prefetch = 0 : i64, scratch_operands = 0 : i64, tpu.core_type = #tpu.core_type<tc>} {
    %c0 = arith.constant 0 : index
    %c0_0 = arith.constant 0 : index
    %0 = vector.load %arg0[%c0, %c0_0] : memref<16x32xf32, #tpu.memory_space<vmem>>, vector<16x32xf32>
    %1 = arith.truncf %0 : vector<16x32xf32> to vector<16x32xbf16>
    %c0_1 = arith.constant 0 : index
    %c0_2 = arith.constant 0 : index
    %2 = vector.load %arg2[%c0_1, %c0_2] : memref<32x384xbf16, #tpu.memory_space<vmem>>, vector<32x384xbf16>
    %cst = arith.constant dense<0.000000e+00> : vector<16x384xf32>
    %3 = tpu.matmul %1, %2, %cst {dimension_numbers = #tpu.dot_dimension_numbers<[1], [0], [0], [1], [0, 0, 1, 1], [], []>} : vector<16x32xbf16>, vector<32x384xbf16>, vector<16x384xf32> -> vector<16x384xf32>
    %c0_3 = arith.constant 0 : index
    %c0_4 = arith.constant 0 : index
    %4 = vector.load %arg3[%c0_3, %c0_4] : memref<1x384xf32, #tpu.memory_space<vmem>>, vector<1x384xf32>
    %5 = vector.broadcast %4 : vector<1x384xf32> to vector<16x384xf32>
    %6 = arith.addf %3, %5 : vector<16x384xf32>
    %7 = vector.extract_strided_slice %6 {offsets = [0, 0], sizes = [16, 128], strides = [1, 1]} : vector<16x384xf32> to vector<16x128xf32>
    %8 = vector.extract_strided_slice %6 {offsets = [0, 128], sizes = [16, 128], strides = [1, 1]} : vector<16x384xf32> to vector<16x128xf32>
    %9 = vector.extract_strided_slice %6 {offsets = [0, 256], sizes = [16, 128], strides = [1, 1]} : vector<16x384xf32> to vector<16x128xf32>
    %10 = arith.truncf %7 : vector<16x128xf32> to vector<16x128xbf16>
    %11 = arith.truncf %8 : vector<16x128xf32> to vector<16x128xbf16>
    %cst_5 = arith.constant dense<0.000000e+00> : vector<16x16xf32>
    %12 = tpu.matmul %10, %11, %cst_5 {dimension_numbers = #tpu.dot_dimension_numbers<[1], [1], [0], [0], [0, 0, 1, 0], [], []>} : vector<16x128xbf16>, vector<16x128xbf16>, vector<16x16xf32> -> vector<16x16xf32>
    %c0_6 = arith.constant 0 : index
    %c0_7 = arith.constant 0 : index
    %13 = vector.load %arg1[%c0_6, %c0_7] : memref<16x16xf32, #tpu.memory_space<vmem>>, vector<16x16xf32>
    %14 = arith.addf %12, %13 : vector<16x16xf32>
    %cst_8 = arith.constant dense<0xFF800000> : vector<16xf32>
    %15 = vector.multi_reduction <maximumf>, %14, %cst_8 [1] : vector<16x16xf32> to vector<16xf32>
    %16 = vector.shape_cast %15 : vector<16xf32> to vector<16x1xf32>
    %17 = vector.broadcast %16 : vector<16x1xf32> to vector<16x16xf32>
    %18 = arith.subf %14, %17 : vector<16x16xf32>
    %19 = math.exp %18 : vector<16x16xf32>
    %cst_9 = arith.constant dense<0.000000e+00> : vector<16xf32>
    %20 = vector.multi_reduction <add>, %19, %cst_9 [1] : vector<16x16xf32> to vector<16xf32>
    %21 = vector.shape_cast %20 : vector<16xf32> to vector<16x1xf32>
    %22 = tpu.reciprocal %21 {approx = true} : vector<16x1xf32> -> vector<16x1xf32>
    %23 = vector.broadcast %22 : vector<16x1xf32> to vector<16x16xf32>
    %24 = arith.mulf %19, %23 : vector<16x16xf32>
    %25 = arith.truncf %24 : vector<16x16xf32> to vector<16x16xbf16>
    %26 = arith.truncf %9 : vector<16x128xf32> to vector<16x128xbf16>
    %cst_10 = arith.constant dense<0.000000e+00> : vector<16x128xf32>
    %27 = tpu.matmul %25, %26, %cst_10 {dimension_numbers = #tpu.dot_dimension_numbers<[1], [0], [0], [1], [0, 0, 1, 1], [], []>} : vector<16x16xbf16>, vector<16x128xbf16>, vector<16x128xf32> -> vector<16x128xf32>
    %28 = arith.truncf %27 : vector<16x128xf32> to vector<16x128xbf16>
    %c0_11 = arith.constant 0 : index
    %c0_12 = arith.constant 0 : index
    %29 = vector.load %arg4[%c0_11, %c0_12] : memref<128x128xbf16, #tpu.memory_space<vmem>>, vector<128x128xbf16>
    %cst_13 = arith.constant dense<0.000000e+00> : vector<16x128xf32>
    %30 = tpu.matmul %28, %29, %cst_13 {dimension_numbers = #tpu.dot_dimension_numbers<[1], [0], [0], [1], [0, 0, 1, 1], [], []>} : vector<16x128xbf16>, vector<128x128xbf16>, vector<16x128xf32> -> vector<16x128xf32>
    %c0_14 = arith.constant 0 : index
    %c0_15 = arith.constant 0 : index
    %31 = vector.load %arg5[%c0_14, %c0_15] : memref<1x128xf32, #tpu.memory_space<vmem>>, vector<1x128xf32>
    %32 = vector.broadcast %31 : vector<1x128xf32> to vector<16x128xf32>
    %33 = arith.addf %30, %32 : vector<16x128xf32>
    %c0_16 = arith.constant 0 : index
    %c0_17 = arith.constant 0 : index
    %34 = vector.load %arg6[%c0_16, %c0_17] : memref<16x128xf32, #tpu.memory_space<vmem>>, vector<16x128xf32>
    tpu.vector_store %arg6[%c0_16, %c0_17], %33 {strides = array<i32>} : memref<16x128xf32, #tpu.memory_space<vmem>>, vector<16x128xf32>,
    return
  }
}

</mosaic_0001>

<bundles_post_ra>
// kernel: self_attention_v4.1
= control target key start
LH: loop header
LB: loop body
LE: loop exit
PB: predicated region body
PF: predicated region fallthrough
CT: control target
= control target key end

     0   :  { %11 = vsyncpa [#allocation3], 0  ;;  %s725_s0 = inlined_call_operand.vmem [shape: f32[16,32], index: 0, kind: input, shape index: {}]   ;;  %s726_s1 = inlined_call_operand.hbm [shape: f32[16,16], index: 1, kind: input, shape index: {}]   ;;  %s727_s2 = inlined_call_operand.hbm [shape: bf16[32,384], index: 2, kind: input, shape index: {}]   ;;  %s728_s3 = inlined_call_operand.vmem [shape: f32[1,384], index: 3, kind: input, shape index: {}]   ;;  %s729_s4 = inlined_call_operand.vmem [shape: bf16[128,128], index: 4, kind: input, shape index: {}]   ;;  %s730_s5 = inlined_call_operand.vmem [shape: f32[1,128], index: 5, kind: input, shape index: {}]   ;;  %s731_s6 = inlined_call_operand.vmem [shape: f32[16,128], index: 6, kind: output, shape index: {}]  }
   0x1   :  { %12 = vsyncpa [#allocation5], 0  ;;  %s590_s21 = smov [#allocation2]   ;;  %s542_s25 = scalar_lea.hbm %s726_s1, 256 }
   0x2   :  { %s20_s22 = sshll.u32 %s590_s21, 4  ;;  %p543_p0 = scmp.ne.s32.totalorder %s726_s1, %s542_s25  ;;  %s21_s22 = int_to_ptr.vmem [resolvable:$true] %s20_s22 }
   0x3   :  { %p546_p1 = scmp.lt.u32.totalorder %s542_s25, %s726_s1 }
   0x5   :  { %p548_p2 = pnand %p546_p1, %p543_p0 }
   0x7   :  { %551 = shalt.err (!%p548_p2)
}
   0x8   :  { %s552_s30 = scalar_lea.vmem %s21_s22, 256  ;;  %p557_p4 = scmp.lt.s32.totalorder %s21_s22, %s21_s22 }
   0x9   :  { %p553_p3 = scmp.ne.s32.totalorder %s21_s22, %s552_s30  ;;  %p558_p5 = scmp.lt.s32.totalorder %s552_s30, %s552_s30 }
   0xb   :  { %p559_p6 = por %p558_p5, %p557_p4 }
   0xd   :  { %p560_p7 = pnand %p559_p6, %p553_p3 }
   0xf   :  { %563 = shalt.err (!%p560_p7)
}
  0x10   :  { %s591_s7 = smov 128   ;;  %s592_s8 = smov 8  }
  0x11   :  { %26 = dma.hbm_to_vmem [thread:$0]  %s726_s1, 256, %s21_s22, [#allocation3], %s591_s7, %s591_s7, %s592_s8  }
  0x12   :  { %s593_s11 = smov [#allocation4]   ;;  %s564_s15 = scalar_lea.hbm %s727_s2, 768 }
  0x13   :  { %s32_s12 = sshll.u32 %s593_s11, 4  ;;  %p565_p8 = scmp.ne.s32.totalorder %s727_s2, %s564_s15  ;;  %s33_s12 = int_to_ptr.vmem [resolvable:$true] %s32_s12 }
  0x14   :  { %p568_p9 = scmp.lt.u32.totalorder %s564_s15, %s727_s2 }
  0x16   :  { %p570_p10 = pnand %p568_p9, %p565_p8 }
  0x18   :  { %573 = shalt.err (!%p570_p10)
}
  0x19   :  { %s574_s20 = scalar_lea.vmem %s33_s12, 768  ;;  %p579_p12 = scmp.lt.s32.totalorder %s33_s12, %s33_s12 }
  0x1a   :  { %p575_p11 = scmp.ne.s32.totalorder %s33_s12, %s574_s20  ;;  %p580_p13 = scmp.lt.s32.totalorder %s574_s20, %s574_s20 }
  0x1c   :  { %p581_p0 = por %p580_p13, %p579_p12 }
  0x1e   :  { %p582_p1 = pnand %p581_p0, %p575_p11 }
  0x20   :  { %585 = shalt.err (!%p582_p1)
}
  0x21   :  { %s594_s1 = smov 192   ;;  %s595_s21 = smov 12  }
  0x22   :  { %38 = dma.hbm_to_vmem [thread:$0]  %s727_s2, 768, %s33_s12, [#allocation5], %s594_s1, %s594_s1, %s595_s21  }
  0x23   :  { %586 = dma.done.wait [#allocation3], 256  }
  0x24   :  { %587 = vsyncadd [#allocation3], 4294967040 }
  0x25   :  { %588 = dma.done.wait [#allocation5], 768  }
  0x26   :  { %589 = vsyncadd [#allocation5], 4294966528  ;;  %v596_v0 = vmov 0   ;;  %v597_v1 = vmov 0.0   ;;  %v518_v2 = vld [vmem:[#allocation4 + $0x4] ss:$12 sps:$4 sm:$0xff]   ;;  %v65_v11 = vlaneseq }
  0x27   :  { %148 = vmatprep.mubr.bf16.mxu1 %v596_v0  ;;  %489 = vmatprep.subr.bf16.mxu0 %v597_v1  ;;  %v520_v3 = vld [vmem:[#allocation4] ss:$12 sps:$4 sm:$0xff]   ;;  %v521_v4 = vld [vmem:[#allocation4 + $0x1c] ss:$12 sps:$4 sm:$0xff]   ;;  %v523_v5 = vld [vmem:[#allocation4 + $0x18] ss:$12 sps:$4 sm:$0xff]  }
  0x28   :  { %116 = vmatprep.subr.bf16.mxu1 %v518_v2  ;;  %v52_v6 = vld [vmem:[%s725_s0] sm:$0xff]  ;;  %v53_v7 = vld [vmem:[%s725_s0 + $0x8] sm:$0xff]  ;;  %vm112_vm0 = vcmask 261120   ;;  %v525_v10 = vld [vmem:[#allocation4 + $0x20] ss:$12 sps:$4 sm:$0xff]   ;;  %vm598_vm1 = vmmov 0  }
  0x29   :  { %117 = vmatpush1.bf16.msra.mxu1 %v520_v3  ;;  %v524_v8 = vld [vmem:[#allocation4 + $0x8] ss:$12 sps:$4 sm:$0xff]   ;;  %v54_v9 = vpack.c.bf16 %v53_v7, %v52_v6  ;;  %505 = vmatprep.mubr.msk.bf16.mxu0 %vm598_vm1, %v597_v1  ;;  %v66_v12 = vshrl.u32 %v65_v11, 7  ;;  %v63_v14 = vld [vmem:[%s728_s3] sm:$0x7]  ;;  %v203_v39 = vld [vmem:[#allocation2 + $0x8] sm:$0xff] }
  0x2a   :  { %118 = vmatprep.subr.bf16.mxu1 %v521_v4  ;;  %v202_v37 = vld [vmem:[#allocation2] sm:$0xff]  ;;  %vm245_vm2 = vcmask 130048   ;;  %v527_v58 = vld [vmem:[%s729_s4 + $0x8] sm:$0xff]   ;;  %v528_v59 = vld [vmem:[%s729_s4 + $0x10] sm:$0xff]  }
  0x2b   :  { %v67_v13 = vsub.s32 0, %v66_v12  ;;  %v71_v15 = vsub.s32 1, %v66_v12  ;;  %v75_v28 = vsub.s32 2, %v66_v12  ;;  %v526_v57 = vld [vmem:[%s729_s4] sm:$0xff]   ;;  %v529_v60 = vld [vmem:[%s729_s4 + $0x18] sm:$0xff]   ;;  %v531_v62 = vld [vmem:[%s729_s4 + $0x28] sm:$0xff]  }
  0x2c   :  { %490 = vmatpush3.bf16.msra.mxu0 %v526_v57  ;;  %v530_v61 = vld [vmem:[%s729_s4 + $0x20] sm:$0xff]   ;;  %v532_v63 = vld [vmem:[%s729_s4 + $0x30] sm:$0xff]  }
  0x2d   :  { %119 = vmatpush1.bf16.msra.mxu1 %v523_v5  ;;  %v68_v16 = vrot.slane %v63_v14, %v67_v13  ;;  %v72_v18 = vrot.slane %v63_v14, %v71_v15  ;;  %v76_v29 = vrot.slane %v63_v14, %v75_v28  ;;  %491 = vmatprep.subr.bf16.mxu0 %v597_v1  ;;  %v444_v13 = vld [vmem:[%s730_s5] ss:$0 sm:$0xff] }
  0x2e   :  { %469 = vmatprep.subr.bf16.mxu1 %v597_v1 }
  0x30   :  { %441 = vmatmul.mubr.msk.bf16.vlgmr.msra.gmra.mrb[0].mxu1 %vm112_vm0, %v54_v9  ;;  %492 = vmatpush3.bf16.msra.mxu0 %v527_v58 }
  0x31   :  { %470 = vmatpush3.bf16.msra.mxu1 %v524_v8  ;;  %473 = vmatprep.mubr.msk.bf16.mxu1 %vm598_vm1, %v597_v1  ;;  %v533_v8 = vld [vmem:[%s729_s4 + $0x38] sm:$0xff]  }
  0x32   :  { %471 = vmatprep.subr.bf16.mxu1 %v597_v1  ;;  %493 = vmatprep.subr.bf16.mxu0 %v597_v1 }
  0x34   :  { %494 = vmatpush3.bf16.msra.mxu0 %v528_v59 }
  0x35   :  { %472 = vmatpush3.bf16.msra.mxu1 %v525_v10  ;;  %495 = vmatprep.subr.bf16.mxu0 %v597_v1 }
  0x36   :  { %477 = vmatprep.subr.bf16.mxu1 %v597_v1 }
  0x38   :  { %474 = vmatmul.mubr.msk.bf16.vlgmr.msra.gmra.mrb[4].mxu1 %vm112_vm0, %v54_v9  ;;  %496 = vmatpush3.bf16.msra.mxu0 %v529_v60 }
  0x39   :  { %479 = vmatprep.mubr.msk.bf16.mxu1 %vm598_vm1, %v597_v1  ;;  %497 = vmatprep.subr.bf16.mxu0 %v597_v1 }
  0x3c   :  { %498 = vmatpush3.bf16.msra.mxu0 %v530_v61 }
  0x3d   :  { %499 = vmatprep.subr.bf16.mxu0 %v597_v1 }
  0x40   :  { %500 = vmatpush3.bf16.msra.mxu0 %v531_v62 }
  0x41   :  { %501 = vmatprep.subr.bf16.mxu0 %v597_v1 }
  0x44   :  { %502 = vmatpush3.bf16.msra.mxu0 %v532_v63 }
  0x45   :  { %503 = vmatprep.subr.bf16.mxu0 %v597_v1 }
  0x48   :  { %504 = vmatpush3.bf16.msra.mxu0 %v533_v8 }
 0x103   :  { %v150_v17 = vpop.f32.mrb[0].mxu1 }
 0x104   :  { %v152_v19 = vpop.f32.mrb[1].mxu1  ;;  %v151_v21 = vadd.f32 %v150_v17, %v68_v16 }
 0x105   :  { %v154_v20 = vpop.f32.mrb[2].mxu1  ;;  %v153_v24 = vadd.f32 %v152_v19, %v72_v18 }
 0x106   :  { %v155_v22 = vadd.f32 %v154_v20, %v68_v16  ;;  %v156_v23 = vpop.f32.mrb[3].mxu1 }
 0x107   :  { %v157_v25 = vadd.f32 %v156_v23, %v72_v18 }
 0x108   :  { %v200_v26 = vpack.c.bf16 %v155_v22, %v151_v21 }
 0x109   :  { %v201_v27 = vpack.c.bf16 %v157_v25, %v153_v24 }
 0x10b   :  { %478 = vmatpush3.bf16.xpose.msra.mxu1 %v201_v27  ;;  %v193_v30 = vpop.f32.mrb[4].mxu1 }
 0x10c   :  { %483 = vmatprep.subr.bf16.mxu1 %v597_v1  ;;  %v194_v31 = vadd.f32 %v193_v30, %v76_v29  ;;  %v475_v32 = vpop.f32.mrb[5].mxu1 }
 0x10d   :  { %v196_v33 = vpop.f32.mrb[6].mxu1 }
 0x10e   :  { %v197_v34 = vadd.f32 %v196_v33, %v76_v29  ;;  %v476_v35 = vpop.f32.mrb[7].mxu1 }
 0x110   :  { %v269_v36 = vpack.c.bf16 %v197_v34, %v194_v31 }
 0x112   :  { %480 = vmatmul.mubr.bf16.vlgmr.msra.gmra.mrb[8].mxu1 %v200_v26 }
 0x113   :  { %485 = vmatprep.mubr.msk.bf16.mxu1 %vm598_vm1, %v597_v1  ;;  %484 = vmatpush3.bf16.msra.mxu1 %v269_v36 }
 0x1e5   :  { %v238_v38 = vpop.f32.mrb[8].mxu1 }
 0x1e6   :  { %v239_v40 = vadd.f32 %v238_v38, %v202_v37  ;;  %v481_v41 = vpop.f32.mrb[9].mxu1 }
 0x1e7   :  { %v241_v42 = vpop.f32.mrb[10].mxu1 }
 0x1e8   :  { %v242_v43 = vadd.f32 %v241_v42, %v203_v39  ;;  %v482_v44 = vpop.f32.mrb[11].mxu1  ;;  %v246_v45 = vsel %vm245_vm2, %v239_v40, -inf }
 0x1e9   :  { %247 = vmax.xlane.f32.xlu0 %v246_v45 }
 0x1ea   :  { %v249_v46 = vsel %vm245_vm2, %v242_v43, -inf }
 0x1ed   :  { %250 = vmax.xlane.f32.xlu0 %v249_v46 }
 0x276   :  { %v248_v47 = vpop.xlane.xlu0 %247 }
 0x277   :  { %v252_v48 = vsub.f32 %v239_v40, %v248_v47 }
 0x279   :  { %v254_v49 = vmul.f32 1.442695, %v252_v48 }
 0x27a   :  { %v251_v50 = vpop.xlane.xlu0 %250 }
 0x27b   :  { %534 = vpow2.f32 %v254_v49  ;;  %v253_v51 = vsub.f32 %v242_v43, %v251_v50 }
 0x27d   :  { %v256_v52 = vmul.f32 1.442695, %v253_v51 }
 0x27f   :  { %536 = vpow2.f32 %v256_v52 }
 0x285   :  { %v535_v53 = vpop.eup %534 }
 0x286   :  { %v258_v54 = vsel %vm245_vm2, %v535_v53, 0.0 }
 0x287   :  { %259 = vadd.xlane.f32.xlu1 %v258_v54 }
 0x289   :  { %v537_v55 = vpop.eup %536 }
 0x28a   :  { %v261_v56 = vsel %vm245_vm2, %v537_v55, 0.0 }
 0x28b   :  { %262 = vadd.xlane.f32.xlu1 %v261_v56 }
 0x314   :  { %v260_v0 = vpop.xlane.xlu1 %259 }
 0x315   :  { %538 = vrcp.f32 %v260_v0 }
 0x318   :  { %v263_v2 = vpop.xlane.xlu1 %262 }
 0x319   :  { %540 = vrcp.f32 %v263_v2 }
 0x31f   :  { %v539_v3 = vpop.eup %538 }
 0x320   :  { %v266_v5 = vmul.f32 %v539_v3, %v535_v53 }
 0x323   :  { %v541_v4 = vpop.eup %540 }
 0x324   :  { %v267_v6 = vmul.f32 %v541_v4, %v537_v55 }
 0x326   :  { %v268_v7 = vpack.c.bf16 %v267_v6, %v266_v5 }
 0x328   :  { %486 = vmatmul.mubr.msk.bf16.vlgmr.msra.gmra.mrb[12].mxu1 %vm245_vm2, %v268_v7 }
 0x3fb   :  { %v307_v9 = vpop.f32.mrb[12].mxu1 }
 0x3fc   :  { %v487_v10 = vpop.f32.mrb[13].mxu1 }
 0x3fd   :  { %v310_v11 = vpop.f32.mrb[14].mxu1 }
 0x3fe   :  { %v314_v1 = vpack.c.bf16 %v310_v11, %v307_v9  ;;  %v488_v12 = vpop.f32.mrb[15].mxu1 }
 0x400   :  { %506 = vmatmul.mubr.bf16.vlgmr.msra.gmra.mrb[0].mxu0 %v314_v1 }
 0x4d3   :  { %v420_v14 = vpop.f32.mrb[0].mxu0 }
 0x4d4   :  { %v421_v15 = vadd.f32 %v444_v13, %v420_v14  ;;  %v507_v16 = vpop.f32.mrb[1].mxu0 }
 0x4d5   :  { %v423_v17 = vpop.f32.mrb[2].mxu0 }
 0x4d6   :  { %427 = vst [vmem:[%s731_s6] sm:$0xff] %v421_v15  ;;  %v424_v18 = vadd.f32 %v444_v13, %v423_v17  ;;  %v508_v19 = vpop.f32.mrb[3].mxu0 }
 0x4d8   :  { %428 = vst [vmem:[%s731_s6 + $0x8] sm:$0xff] %v424_v18 }
 0x4d9   :  { %433 = vsyncpa [#allocation3], 1 }
 0x4da   :  { %434 = vsyncpa [#allocation5], 1 }

</bundles_post_ra>
